<compile_context>
chip_gen: v7x
topology: tpu7x:2x2x1
jax: 0.10.0
libtpu: 0.0.40
codegen_flags: <defaults>
</compile_context>

<pallas_src>
import functools

import jax
import jax.numpy as jnp
from jax.experimental import pallas as pl
from jax.experimental.pallas import tpu as pltpu


def _round_up(x, m):
    return (x + m - 1) // m * m


def charcnn_kernel(x_ref, w_ref, b_ref, o_ref, *, K, C):
    """One grid step over TN = o_ref.shape[0] words.

    x_ref: (TN*C, D)  char embeddings, word-major / char-position-minor (compute dtype)
    w_ref: (K, D, Co) conv weights (compute dtype), resident across the grid
    b_ref: (1, Co)    conv bias (f32)
    o_ref: (TN, Co)   pooled outputs
    """
    TM, _ = x_ref.shape
    Co = w_ref.shape[2]
    TN = TM // C
    L = C - K + 1  # number of valid conv positions per word

    x = x_ref[...]

    # Conv as K large-M matmuls on the MXU: Y_k[m] = x[m] @ W[k], then re-align the
    # k-shift with a sublane rotation so that acc[m] = sum_k Y_k[m + k].
    acc = jnp.zeros((TM, Co), jnp.float32)
    for k in range(K):  # K is a small static constant (3)
        y = jnp.dot(x, w_ref[k], preferred_element_type=jnp.float32)  # (TM, Co)
        if k:
            # Rotate rows toward lower indices by k (shift = TM - k == -k mod TM).
            # Wrapped / cross-word rows only land on char positions l >= L, which are
            # masked out below, so the rotation is exact.
            y = pltpu.roll(y, shift=TM - k, axis=0)
        acc = acc + y

    # (TM, Co) -> (TN, C, Co): layout-free reshape when C is a multiple of 8.
    acc3 = acc.reshape(TN, C, Co)
    pos = jax.lax.broadcasted_iota(jnp.int32, (TN, C, Co), 1)
    acc3 = jnp.where(pos < L, acc3, -jnp.inf)

    pooled = jnp.max(acc3, axis=1)  # max-pool over conv positions -> (TN, Co)
    # Bias + ReLU post-pool: exact, since both are monotone and commute with max.
    o_ref[...] = jnp.maximum(pooled + b_ref[...], 0.0).astype(o_ref.dtype)


def char_cnn_encoding(x, w, b, *, tile_n=512, compute_dtype=jnp.bfloat16,
                      vmem_limit_bytes=48 * 1024 * 1024):
    """CharCNNEncoding forward.

    x: (bs, t_maxlen, c_maxlen, D) char embeddings
    w: (K, D, Co) conv weights (nn.Conv2d(1, Co, (K, D)).weight re-laid-out)
    b: (Co,)      conv bias
    returns (bs, t_maxlen, Co) in x.dtype
    """
    bs, t_maxlen, c_maxlen, D = x.shape
    K, _, Co = w.shape
    assert c_maxlen >= K, "need at least K char positions"
    N = bs * t_maxlen

    # Tile sizing + tail handling: tiles are whole words, rounded to multiples of 8
    # sublanes; the word axis is zero-padded up to a multiple of the tile.
    tile_n = max(8, tile_n - tile_n % 8)
    tile_n_eff = min(tile_n, _round_up(N, 8))
    N_pad = _round_up(N, tile_n_eff)
    grid = (N_pad // tile_n_eff,)

    # HBM-bound kernel: halve the traffic of the dominant operand with bf16 inputs
    # (MXU accumulates in f32; post-pool elementwise stays f32).
    x_flat = x.reshape(N * c_maxlen, D).astype(compute_dtype)
    if N_pad != N:
        x_flat = jnp.pad(x_flat, ((0, (N_pad - N) * c_maxlen), (0, 0)))
    w_c = w.astype(compute_dtype)
    b2 = b.reshape(1, Co).astype(jnp.float32)

    out = pl.pallas_call(
        functools.partial(charcnn_kernel, K=K, C=c_maxlen),
        out_shape=jax.ShapeDtypeStruct((N_pad, Co), x.dtype),
        grid_spec=pltpu.PrefetchScalarGridSpec(
            num_scalar_prefetch=0,
            grid=grid,
            in_specs=[
                pl.BlockSpec((tile_n_eff * c_maxlen, D), lambda i: (i, 0)),
                pl.BlockSpec((K, D, Co), lambda i: (0, 0, 0)),  # resident, no per-step DMA
                pl.BlockSpec((1, Co), lambda i: (0, 0)),
            ],
            out_specs=pl.BlockSpec((tile_n_eff, Co), lambda i: (i, 0)),
        ),
        compiler_params=pltpu.CompilerParams(
            dimension_semantics=("parallel",),
            vmem_limit_bytes=vmem_limit_bytes,
        ),
    )(x_flat, w_c, b2)

    if N_pad != N:
        out = out[:N]
    return out.reshape(bs, t_maxlen, Co)


def char_cnn_reference(x, w, b):
    """Pure-JAX f32 reference of the same forward pass (bias+ReLU before max-pool)."""
    bs, t_maxlen, c_maxlen, D = x.shape
    K, _, Co = w.shape
    N = bs * t_maxlen
    xf = x.reshape(N, c_maxlen, D).astype(jnp.float32)
    L = c_maxlen - K + 1
    acc = jnp.zeros((N, L, Co), jnp.float32)
    for k in range(K):
        acc = acc + jnp.einsum("nld,dc->nlc", xf[:, k:k + L, :], w[k].astype(jnp.float32))
    acc = jax.nn.relu(acc + b[None, None, :])
    return jnp.max(acc, axis=1).reshape(bs, t_maxlen, Co)


if __name__ == "__main__":
    # Small shapes consistent with the module's forward:
    bs, t_maxlen, c_maxlen, D = 2, 8, 16, 32   # char-embedding dim D
    Co, K = 32, 3                              # CNNEncoding hidden dim, Ks=[3]

    key = jax.random.PRNGKey(0)
    kx, kw, kb = jax.random.split(key, 3)

    x = jax.random.normal(kx, (bs, t_maxlen, c_maxlen, D), dtype=jnp.float32)
    # Deterministic synthetic parameters (shapes match nn.Conv2d(1, Co, (K, D))).
    fan_in = K * D
    bound = 1.0 / (fan_in ** 0.5)
    w = jax.random.uniform(kw, (K, D, Co), jnp.float32, -bound, bound)
    b = jax.random.uniform(kb, (Co,), jnp.float32, -bound, bound)

    # 1) Default (bf16 compute) path, single grid step at these tiny shapes.
    out = char_cnn_encoding(x, w, b)
    jax.block_until_ready(out)
    ref = char_cnn_reference(x, w, b)
    assert out.shape == (bs, t_maxlen, Co)
    assert jnp.allclose(out, ref, atol=3e-2, rtol=3e-2)

    # 2) f32 compute, multi-step grid + non-divisible word count (exercises padding).
    x2 = x[:, :7]                                            # N = 14 words
    out2 = char_cnn_encoding(x2, w, b, tile_n=8, compute_dtype=jnp.float32)
    jax.block_until_ready(out2)
    ref2 = char_cnn_reference(x2, w, b)
    assert out2.shape == (bs, 7, Co)
    assert jnp.allclose(out2, ref2, atol=1e-4, rtol=1e-4)

    print("KERNEL_OK")
</pallas_src>

<mosaic_0001>
module attributes {stable_mosaic.version = 11 : i64} {
  func.func @charcnn_kernel(%arg0: i32, %arg1: memref<256x32xbf16, #tpu.memory_space<vmem>>, %arg2: memref<3x32x32xbf16, #tpu.memory_space<vmem>>, %arg3: memref<1x32xf32, #tpu.memory_space<vmem>>, %arg4: memref<16x32xf32, #tpu.memory_space<vmem>>) attributes {dimension_semantics = [#tpu.dimension_semantics<parallel>], iteration_bounds = array<i64: 1>, scalar_prefetch = 0 : i64, scratch_operands = 0 : i64, tpu.core_type = #tpu.core_type<tc>, window_params = [{transform_indices = @transform_0, window_bounds = array<i64: 256, 32>}, {pipeline_mode = #tpu.pipeline_mode<synchronous>, transform_indices = @transform_1, window_bounds = array<i64: 3, 32, 32>}, {pipeline_mode = #tpu.pipeline_mode<synchronous>, transform_indices = @transform_2, window_bounds = array<i64: 1, 32>}, {transform_indices = @transform_3, window_bounds = array<i64: 16, 32>}]} {
    %c0 = arith.constant 0 : index
    %c0_0 = arith.constant 0 : index
    %0 = vector.load %arg1[%c0, %c0_0] : memref<256x32xbf16, #tpu.memory_space<vmem>>, vector<256x32xbf16>
    %cst = arith.constant 0.000000e+00 : f32
    %1 = vector.broadcast %cst : f32 to vector<256x32xf32>
    %c0_1 = arith.constant 0 : index
    %c0_2 = arith.constant 0 : index
    %c0_3 = arith.constant 0 : index
    %2 = vector.load %arg2[%c0_1, %c0_2, %c0_3] : memref<3x32x32xbf16, #tpu.memory_space<vmem>>, vector<1x32x32xbf16>
    %3 = vector.shape_cast %2 : vector<1x32x32xbf16> to vector<32x32xbf16>
    %cst_4 = arith.constant dense<0.000000e+00> : vector<256x32xf32>
    %4 = tpu.matmul %0, %3, %cst_4 {dimension_numbers = #tpu.dot_dimension_numbers<[1], [0], [0], [1], [0, 0, 1, 1], [], []>} : vector<256x32xbf16>, vector<32x32xbf16>, vector<256x32xf32> -> vector<256x32xf32>
    %5 = arith.addf %1, %4 : vector<256x32xf32>
    %c1 = arith.constant 1 : index
    %c0_5 = arith.constant 0 : index
    %c0_6 = arith.constant 0 : index
    %6 = vector.load %arg2[%c1, %c0_5, %c0_6] : memref<3x32x32xbf16, #tpu.memory_space<vmem>>, vector<1x32x32xbf16>
    %7 = vector.shape_cast %6 : vector<1x32x32xbf16> to vector<32x32xbf16>
    %cst_7 = arith.constant dense<0.000000e+00> : vector<256x32xf32>
    %8 = tpu.matmul %0, %7, %cst_7 {dimension_numbers = #tpu.dot_dimension_numbers<[1], [0], [0], [1], [0, 0, 1, 1], [], []>} : vector<256x32xbf16>, vector<32x32xbf16>, vector<256x32xf32> -> vector<256x32xf32>
    %c255_i32 = arith.constant 255 : i32
    %9 = tpu.dynamic_rotate %8 by %c255_i32 dim 0 : vector<256x32xf32>, i32 -> vector<256x32xf32>
    %10 = arith.addf %5, %9 : vector<256x32xf32>
    %c2 = arith.constant 2 : index
    %c0_8 = arith.constant 0 : index
    %c0_9 = arith.constant 0 : index
    %11 = vector.load %arg2[%c2, %c0_8, %c0_9] : memref<3x32x32xbf16, #tpu.memory_space<vmem>>, vector<1x32x32xbf16>
    %12 = vector.shape_cast %11 : vector<1x32x32xbf16> to vector<32x32xbf16>
    %cst_10 = arith.constant dense<0.000000e+00> : vector<256x32xf32>
    %13 = tpu.matmul %0, %12, %cst_10 {dimension_numbers = #tpu.dot_dimension_numbers<[1], [0], [0], [1], [0, 0, 1, 1], [], []>} : vector<256x32xbf16>, vector<32x32xbf16>, vector<256x32xf32> -> vector<256x32xf32>
    %c254_i32 = arith.constant 254 : i32
    %14 = tpu.dynamic_rotate %13 by %c254_i32 dim 0 : vector<256x32xf32>, i32 -> vector<256x32xf32>
    %15 = arith.addf %10, %14 : vector<256x32xf32>
    %16 = vector.shape_cast %15 : vector<256x32xf32> to vector<16x16x32xf32>
    %17 = tpu.iota {dimensions = array<i32: 1>} : vector<16x16x32xi32>
    %c14_i32 = arith.constant 14 : i32
    %18 = vector.broadcast %c14_i32 : i32 to vector<16x16x32xi32>
    %19 = arith.cmpi slt, %17, %18 : vector<16x16x32xi32>
    %cst_11 = arith.constant 0xFF800000 : f32
    %20 = vector.broadcast %cst_11 : f32 to vector<16x16x32xf32>
    %21 = arith.select %19, %16, %20 : vector<16x16x32xi1>, vector<16x16x32xf32>
    %cst_12 = arith.constant dense<0xFF800000> : vector<16x32xf32>
    %22 = vector.multi_reduction <maximumf>, %21, %cst_12 [1] : vector<16x16x32xf32> to vector<16x32xf32>
    %c0_13 = arith.constant 0 : index
    %c0_14 = arith.constant 0 : index
    %23 = vector.load %arg3[%c0_13, %c0_14] : memref<1x32xf32, #tpu.memory_space<vmem>>, vector<1x32xf32>
    %24 = vector.broadcast %23 : vector<1x32xf32> to vector<16x32xf32>
    %25 = arith.addf %22, %24 : vector<16x32xf32>
    %cst_15 = arith.constant 0.000000e+00 : f32
    %26 = vector.broadcast %cst_15 : f32 to vector<16x32xf32>
    %27 = arith.maximumf %25, %26 : vector<16x32xf32>
    %c0_16 = arith.constant 0 : index
    %c0_17 = arith.constant 0 : index
    %28 = vector.load %arg4[%c0_16, %c0_17] : memref<16x32xf32, #tpu.memory_space<vmem>>, vector<16x32xf32>
    tpu.vector_store %arg4[%c0_16, %c0_17], %27 {strides = array<i32>} : memref<16x32xf32, #tpu.memory_space<vmem>>, vector<16x32xf32>,
    return
  }
  func.func @transform_0(%arg0: i32) -> (i32, i32) {
    %c0_i32 = arith.constant 0 : i32
    %c0_i32_0 = arith.constant 0 : i32
    return %arg0, %c0_i32 : i32, i32
  }
  func.func @transform_1(%arg0: i32) -> (i32, i32, i32) {
    %c0_i32 = arith.constant 0 : i32
    %c0_i32_0 = arith.constant 0 : i32
    %c0_i32_1 = arith.constant 0 : i32
    %c0_i32_2 = arith.constant 0 : i32
    return %c0_i32, %c0_i32_0, %c0_i32_1 : i32, i32, i32
  }
  func.func @transform_2(%arg0: i32) -> (i32, i32) {
    %c0_i32 = arith.constant 0 : i32
    %c0_i32_0 = arith.constant 0 : i32
    %c0_i32_1 = arith.constant 0 : i32
    return %c0_i32, %c0_i32_0 : i32, i32
  }
  func.func @transform_3(%arg0: i32) -> (i32, i32) {
    %c0_i32 = arith.constant 0 : i32
    %c0_i32_0 = arith.constant 0 : i32
    return %arg0, %c0_i32 : i32, i32
  }
}

</mosaic_0001>

<bundles_post_ra>
// kernel: tpu_custom_call.1
= control target key start
LH: loop header
LB: loop body
LE: loop exit
PB: predicated region body
PF: predicated region fallthrough
CT: control target
= control target key end

     0   :  { %vm149_vm0 = vcmask 261120   ;;  %s2047_s0 = inlined_call_operand.vmem [shape: bf16[256,32], index: 0, kind: input, shape index: {}]   ;;  %s2048_s1 = inlined_call_operand.vmem [shape: bf16[3,32,32], index: 1, kind: input, shape index: {}]   ;;  %s2049_s2 = inlined_call_operand.vmem [shape: f32[1,32], index: 2, kind: input, shape index: {}]   ;;  %s2050_s3 = inlined_call_operand.hbm [shape: f32[16,32], index: 3, kind: output, shape index: {}]  }
   0x1   :  { %v1411_v0 = vld [vmem:[%s2048_s1 + $0x10] sm:$0xff]   ;;  %v1412_v1 = vld [vmem:[%s2048_s1 + $0x18] sm:$0xff]   ;;  %v1413_v2 = vld [vmem:[%s2047_s0] sm:$0xff]  }
   0x2   :  { %1296 = vmatprep.subr.bf16.mxu0 %v1411_v0  ;;  %1404 = vmatprep.subr.bf16.mxu1 %v1411_v0  ;;  %v1492_v3 = vld [vmem:[%s2047_s0 + $0x40] sm:$0xff]   ;;  %v1415_v4 = vld [vmem:[%s2047_s0 + $0x8] sm:$0xff]   ;;  %v1419_v8 = vld [vmem:[%s2047_s0 + $0x10] sm:$0xff]  }
   0x3   :  { %1297 = vmatpush3.bf16.msra.mxu0 %v1411_v0  ;;  %1406 = vmatpush3.bf16.msra.mxu1 %v1411_v0  ;;  %v1416_v5 = vld [vmem:[%s2047_s0 + $0x48] sm:$0xff]   ;;  %v1417_v6 = vld [vmem:[%s2048_s1 + $0x20] sm:$0xff]   ;;  %v1420_v9 = vld [vmem:[%s2047_s0 + $0x50] sm:$0xff]  }
   0x4   :  { %1298 = vmatprep.subr.bf16.mxu0 %v1412_v1  ;;  %1405 = vmatprep.subr.bf16.mxu1 %v1412_v1  ;;  %v1418_v7 = vld [vmem:[%s2048_s1] sm:$0xff]   ;;  %v1421_v10 = vld [vmem:[%s2047_s0 + $0x18] sm:$0xff]   ;;  %v1427_v14 = vld [vmem:[%s2048_s1 + $0x28] sm:$0xff]  }
   0x5   :  { %1300 = vmatprep.mubr.msk.bf16.mxu0 %vm149_vm0, %v1413_v2  ;;  %1316 = vmatprep.mubr.msk.bf16.mxu1 %vm149_vm0, %v1492_v3  ;;  %v1422_v11 = vld [vmem:[%s2047_s0 + $0x58] sm:$0xff]   ;;  %v1423_v12 = vld [vmem:[%s2047_s0 + $0x20] sm:$0xff]   ;;  %v1428_v15 = vld [vmem:[%s2048_s1 + $0x8] sm:$0xff]  }
   0x6   :  { %v1424_v13 = vld [vmem:[%s2047_s0 + $0x60] sm:$0xff]   ;;  %v1425_v16 = vld [vmem:[%s2047_s0 + $0x28] sm:$0xff]  }
   0x7   :  { %1299 = vmatpush3.bf16.msra.mxu0 %v1412_v1  ;;  %1407 = vmatpush3.bf16.msra.mxu1 %v1412_v1  ;;  %v1426_v17 = vld [vmem:[%s2047_s0 + $0x68] sm:$0xff]  }
   0x8   :  { %1368 = vmatprep.subr.bf16.mxu0 %v1417_v6  ;;  %1332 = vmatprep.subr.bf16.mxu1 %v1418_v7 }
   0xa   :  { %1301 = vmatmul.mubr.msk.bf16.vlgmr.msra.gmra.mrb[0].mxu0 %vm149_vm0, %v1415_v4  ;;  %1317 = vmatmul.mubr.msk.bf16.vlgmr.msra.gmra.mrb[0].mxu1 %vm149_vm0, %v1416_v5 }
   0xb   :  { %1369 = vmatpush3.bf16.msra.mxu0 %v1417_v6  ;;  %1333 = vmatpush3.bf16.msra.mxu1 %v1418_v7 }
   0xc   :  { %1304 = vmatprep.mubr.msk.bf16.mxu0 %vm149_vm0, %v1419_v8  ;;  %1320 = vmatprep.mubr.msk.bf16.mxu1 %vm149_vm0, %v1420_v9 }
   0xd   :  { %1370 = vmatprep.subr.bf16.mxu0 %v1427_v14  ;;  %1334 = vmatprep.subr.bf16.mxu1 %v1428_v15 }
   0xf   :  { %1371 = vmatpush3.bf16.msra.mxu0 %v1427_v14  ;;  %1335 = vmatpush3.bf16.msra.mxu1 %v1428_v15 }
  0x12   :  { %1305 = vmatmul.mubr.msk.bf16.gmra.mrb[4].mxu0 %vm149_vm0, %v1421_v10  ;;  %1321 = vmatmul.mubr.msk.bf16.gmra.mrb[4].mxu1 %vm149_vm0, %v1422_v11 }
  0x13   :  { %1308 = vmatprep.mubr.msk.bf16.mxu0 %vm149_vm0, %v1423_v12  ;;  %1324 = vmatprep.mubr.msk.bf16.mxu1 %vm149_vm0, %v1424_v13 }
  0x14   :  { %8 = vsyncpa [#allocation3], 0  ;;  %v1429_v18 = vld [vmem:[%s2047_s0 + $0x30] sm:$0xff]   ;;  %v1431_v20 = vld [vmem:[%s2047_s0 + $0x38] sm:$0xff]   ;;  %v391_v22 = vlaneseq  ;;  %vm1109_vm4 = vcmask 1041409   ;;  %vm1112_vm5 = vcmask 1042434  }
  0x15   :  { %v1430_v19 = vld [vmem:[%s2047_s0 + $0x70] sm:$0xff]   ;;  %v1432_v21 = vld [vmem:[%s2047_s0 + $0x78] sm:$0xff]   ;;  %vm1115_vm6 = vcmask 1043459   ;;  %vm1118_vm7 = vcmask 1044484   ;;  %vm1121_vm8 = vcmask 1045509   ;;  %vm1124_vm9 = vcmask 1046534  }
  0x16   :  { %v1599_v23 = vshrl.u32 %v391_v22, 7  ;;  %vm1127_vm10 = vcmask 1047559  }
  0x18   :  { %vm393_vm1 = vcmp.lt.s32.totalorder %v1599_v23, 7  ;;  %vm809_vm2 = vcmp.lt.s32.totalorder %v1599_v23, 6 }
  0x1a   :  { %1309 = vmatmul.mubr.msk.bf16.gmra.mrb[8].mxu0 %vm149_vm0, %v1425_v16  ;;  %1325 = vmatmul.mubr.msk.bf16.gmra.mrb[8].mxu1 %vm149_vm0, %v1426_v17 }
  0x1b   :  { %1312 = vmatprep.mubr.msk.bf16.mxu0 %vm149_vm0, %v1429_v18  ;;  %1328 = vmatprep.mubr.msk.bf16.mxu1 %vm149_vm0, %v1430_v19 }
  0x22   :  { %1313 = vmatmul.mubr.msk.bf16.gmra.mrb[12].mxu0 %vm149_vm0, %v1431_v20  ;;  %1329 = vmatmul.mubr.msk.bf16.gmra.mrb[12].mxu1 %vm149_vm0, %v1432_v21 }
  0x23   :  { %1336 = vmatprep.mubr.msk.bf16.mxu1 %vm149_vm0, %v1413_v2  ;;  %1372 = vmatprep.mubr.msk.bf16.mxu0 %vm149_vm0, %v1413_v2 }
  0x2a   :  { %1337 = vmatmul.mubr.msk.bf16.vlgmr.msra.gmra.mrb[16].mxu1 %vm149_vm0, %v1415_v4  ;;  %1373 = vmatmul.mubr.msk.bf16.vlgmr.msra.gmra.mrb[16].mxu0 %vm149_vm0, %v1415_v4 }
  0x2b   :  { %1340 = vmatprep.mubr.msk.bf16.mxu1 %vm149_vm0, %v1419_v8  ;;  %1376 = vmatprep.mubr.msk.bf16.mxu0 %vm149_vm0, %v1419_v8 }
  0x32   :  { %1341 = vmatmul.mubr.msk.bf16.gmra.mrb[20].mxu1 %vm149_vm0, %v1421_v10  ;;  %1377 = vmatmul.mubr.msk.bf16.gmra.mrb[20].mxu0 %vm149_vm0, %v1421_v10 }
  0x33   :  { %1344 = vmatprep.mubr.msk.bf16.mxu1 %vm149_vm0, %v1423_v12  ;;  %1380 = vmatprep.mubr.msk.bf16.mxu0 %vm149_vm0, %v1423_v12 }
  0x3a   :  { %1345 = vmatmul.mubr.msk.bf16.gmra.mrb[24].mxu1 %vm149_vm0, %v1425_v16  ;;  %1381 = vmatmul.mubr.msk.bf16.gmra.mrb[24].mxu0 %vm149_vm0, %v1425_v16 }
  0x3b   :  { %1348 = vmatprep.mubr.msk.bf16.mxu1 %vm149_vm0, %v1429_v18  ;;  %1384 = vmatprep.mubr.msk.bf16.mxu0 %vm149_vm0, %v1429_v18 }
  0x42   :  { %1349 = vmatmul.mubr.msk.bf16.gmra.mrb[28].mxu1 %vm149_vm0, %v1431_v20  ;;  %1385 = vmatmul.mubr.msk.bf16.gmra.mrb[28].mxu0 %vm149_vm0, %v1431_v20 }
  0x43   :  { %1352 = vmatprep.mubr.msk.bf16.mxu1 %vm149_vm0, %v1492_v3  ;;  %1388 = vmatprep.mubr.msk.bf16.mxu0 %vm149_vm0, %v1492_v3 }
  0x4a   :  { %1353 = vmatmul.mubr.msk.bf16.gmra.mrb[32].mxu1 %vm149_vm0, %v1416_v5  ;;  %1389 = vmatmul.mubr.msk.bf16.gmra.mrb[32].mxu0 %vm149_vm0, %v1416_v5 }
  0x4b   :  { %1356 = vmatprep.mubr.msk.bf16.mxu1 %vm149_vm0, %v1420_v9  ;;  %1392 = vmatprep.mubr.msk.bf16.mxu0 %vm149_vm0, %v1420_v9 }
  0x52   :  { %1357 = vmatmul.mubr.msk.bf16.gmra.mrb[36].mxu1 %vm149_vm0, %v1422_v11  ;;  %1393 = vmatmul.mubr.msk.bf16.gmra.mrb[36].mxu0 %vm149_vm0, %v1422_v11 }
  0x53   :  { %1360 = vmatprep.mubr.msk.bf16.mxu1 %vm149_vm0, %v1424_v13  ;;  %1396 = vmatprep.mubr.msk.bf16.mxu0 %vm149_vm0, %v1424_v13 }
  0x5a   :  { %1361 = vmatmul.mubr.msk.bf16.gmra.mrb[40].mxu1 %vm149_vm0, %v1426_v17  ;;  %1397 = vmatmul.mubr.msk.bf16.gmra.mrb[40].mxu0 %vm149_vm0, %v1426_v17 }
  0x5b   :  { %1364 = vmatprep.mubr.msk.bf16.mxu1 %vm149_vm0, %v1430_v19  ;;  %1400 = vmatprep.mubr.msk.bf16.mxu0 %vm149_vm0, %v1430_v19 }
  0x62   :  { %1365 = vmatmul.mubr.msk.bf16.gmra.mrb[44].mxu1 %vm149_vm0, %v1432_v21  ;;  %1401 = vmatmul.mubr.msk.bf16.gmra.mrb[44].mxu0 %vm149_vm0, %v1432_v21 }
  0xdd   :  { %v1302_v24 = vpop.f32.mrb[0].mxu0  ;;  %v1318_v25 = vpop.f32.mrb[0].mxu1 }
  0xde   :  { %v377_v26 = vrot.slane %v1318_v25, 1  ;;  %v1601_v27 = vpop.f32.mrb[1].mxu0  ;;  %v1603_v28 = vpop.f32.mrb[1].mxu1  ;;  %v361_v31 = vrot.slane %v1302_v24, 1 }
  0xdf   :  { %v1303_v29 = vpop.f32.mrb[2].mxu0  ;;  %v1319_v30 = vpop.f32.mrb[2].mxu1  ;;  %v359_v36 = vrot.slane %v1601_v27, 1  ;;  %v375_v37 = vrot.slane %v1603_v28, 1 }
  0xe0   :  { %v362_v32 = vrot.slane %v1303_v29, 1  ;;  %v378_v33 = vrot.slane %v1319_v30, 1  ;;  %v235_v34 = vpop.f32.mrb[3].mxu0  ;;  %v299_v35 = vpop.f32.mrb[3].mxu1 }
  0xe1   :  { %v360_v38 = vrot.slane %v235_v34, 1  ;;  %v376_v39 = vrot.slane %v299_v35, 1 }
  0xe2   :  { %v1610_v40 = vsel %vm393_vm1, %v361_v31, %v362_v32  ;;  %v1614_v41 = vsel %vm393_vm1, %v377_v26, %v378_v33 }
  0xe3   :  { %v1620_v42 = vsel %vm393_vm1, %v359_v36, %v360_v38  ;;  %v1624_v43 = vsel %vm393_vm1, %v360_v38, %v361_v31  ;;  %v1630_v44 = vsel %vm393_vm1, %v375_v37, %v376_v39  ;;  %v1634_v45 = vsel %vm393_vm1, %v376_v39, %v377_v26 }
  0xe5   :  { %v1306_v46 = vpop.f32.mrb[4].mxu0  ;;  %v1322_v47 = vpop.f32.mrb[4].mxu1 }
  0xe6   :  { %v381_v48 = vrot.slane %v1322_v47, 1  ;;  %v248_v49 = vpop.f32.mrb[5].mxu0  ;;  %v312_v50 = vpop.f32.mrb[5].mxu1  ;;  %v365_v55 = vrot.slane %v1306_v46, 1 }
  0xe7   :  { %v363_v51 = vrot.slane %v248_v49, 1  ;;  %v379_v52 = vrot.slane %v312_v50, 1  ;;  %v1307_v53 = vpop.f32.mrb[6].mxu0  ;;  %v1323_v54 = vpop.f32.mrb[6].mxu1 }
  0xe8   :  { %v366_v56 = vrot.slane %v1307_v53, 1  ;;  %v382_v57 = vrot.slane %v1323_v54, 1  ;;  %v251_v58 = vpop.f32.mrb[7].mxu0  ;;  %v315_v59 = vpop.f32.mrb[7].mxu1 }
  0xe9   :  { %v364_v60 = vrot.slane %v251_v58, 1  ;;  %v380_v61 = vrot.slane %v315_v59, 1  ;;  %v1638_v62 = vsel %vm393_vm1, %v362_v32, %v363_v51  ;;  %v1642_v63 = vsel %vm393_vm1, %v378_v33, %v379_v52 }
  0xea   :  { %v1646_v0 = vsel %vm393_vm1, %v365_v55, %v366_v56  ;;  %v1650_v1 = vsel %vm393_vm1, %v381_v48, %v382_v57 }
  0xeb   :  { %v1654_v2 = vsel %vm393_vm1, %v363_v51, %v364_v60  ;;  %v1658_v3 = vsel %vm393_vm1, %v364_v60, %v365_v55  ;;  %v1662_v4 = vsel %vm393_vm1, %v379_v52, %v380_v61  ;;  %v1666_v5 = vsel %vm393_vm1, %v380_v61, %v381_v48 }
  0xed   :  { %v1310_v6 = vpop.f32.mrb[8].mxu0  ;;  %v1326_v7 = vpop.f32.mrb[8].mxu1 }
  0xee   :  { %v385_v8 = vrot.slane %v1326_v7, 1  ;;  %v264_v9 = vpop.f32.mrb[9].mxu0  ;;  %v328_v10 = vpop.f32.mrb[9].mxu1  ;;  %v369_v15 = vrot.slane %v1310_v6, 1 }
  0xef   :  { %v367_v11 = vrot.slane %v264_v9, 1  ;;  %v383_v12 = vrot.slane %v328_v10, 1  ;;  %v1311_v13 = vpop.f32.mrb[10].mxu0  ;;  %v1327_v14 = vpop.f32.mrb[10].mxu1 }
  0xf0   :  { %v370_v16 = vrot.slane %v1311_v13, 1  ;;  %v386_v17 = vrot.slane %v1327_v14, 1  ;;  %v267_v18 = vpop.f32.mrb[11].mxu0  ;;  %v331_v19 = vpop.f32.mrb[11].mxu1 }
  0xf1   :  { %v368_v20 = vrot.slane %v267_v18, 1  ;;  %v384_v21 = vrot.slane %v331_v19, 1  ;;  %v1670_v22 = vsel %vm393_vm1, %v366_v56, %v367_v11  ;;  %v1674_v24 = vsel %vm393_vm1, %v382_v57, %v383_v12 }
  0xf2   :  { %v1678_v25 = vsel %vm393_vm1, %v369_v15, %v370_v16  ;;  %v1682_v26 = vsel %vm393_vm1, %v385_v8, %v386_v17 }
  0xf3   :  { %v1686_v29 = vsel %vm393_vm1, %v367_v11, %v368_v20  ;;  %v1690_v30 = vsel %vm393_vm1, %v368_v20, %v369_v15  ;;  %v1694_v31 = vsel %vm393_vm1, %v383_v12, %v384_v21  ;;  %v1698_v32 = vsel %vm393_vm1, %v384_v21, %v385_v8 }
  0xf4   :  { %v1750_v15 = vadd.s32 8, %v1599_v23 }
  0xf5   :  { %v1314_v33 = vpop.f32.mrb[12].mxu0  ;;  %v1330_v34 = vpop.f32.mrb[12].mxu1 }
  0xf6   :  { %v389_v35 = vrot.slane %v1330_v34, 1  ;;  %v280_v38 = vpop.f32.mrb[13].mxu0  ;;  %v344_v39 = vpop.f32.mrb[13].mxu1  ;;  %v373_v50 = vrot.slane %v1314_v33, 1  ;;  %vm876_vm3 = vcmp.lt.s32.totalorder %v1750_v15, 14 }
  0xf7   :  { %v371_v46 = vrot.slane %v280_v38, 1  ;;  %v387_v47 = vrot.slane %v344_v39, 1  ;;  %v1315_v48 = vpop.f32.mrb[14].mxu0  ;;  %v1331_v49 = vpop.f32.mrb[14].mxu1 }
  0xf8   :  { %v374_v51 = vrot.slane %v1315_v48, 1  ;;  %v390_v52 = vrot.slane %v1331_v49, 1  ;;  %v283_v53 = vpop.f32.mrb[15].mxu0  ;;  %v347_v54 = vpop.f32.mrb[15].mxu1 }
  0xf9   :  { %v372_v55 = vrot.slane %v283_v53, 1  ;;  %v388_v56 = vrot.slane %v347_v54, 1  ;;  %v1702_v57 = vsel %vm393_vm1, %v370_v16, %v371_v46  ;;  %v1706_v58 = vsel %vm393_vm1, %v386_v17, %v387_v47 }
  0xfa   :  { %v1710_v59 = vsel %vm393_vm1, %v373_v50, %v374_v51  ;;  %v1716_v60 = vsel %vm393_vm1, %v374_v51, %v375_v37  ;;  %v1720_v61 = vsel %vm393_vm1, %v389_v35, %v390_v52  ;;  %v1726_v6 = vsel %vm393_vm1, %v390_v52, %v359_v36 }
  0xfb   :  { %v1730_v7 = vsel %vm393_vm1, %v371_v46, %v372_v55  ;;  %v1734_v28 = vsel %vm393_vm1, %v372_v55, %v373_v50  ;;  %v1738_v37 = vsel %vm393_vm1, %v387_v47, %v388_v56  ;;  %v1742_v8 = vsel %vm393_vm1, %v388_v56, %v389_v35 }
  0xfd   :  { %v1338_v27 = vpop.f32.mrb[16].mxu1  ;;  %v1374_v9 = vpop.f32.mrb[16].mxu0 }
  0xfe   :  { %v481_v36 = vadd.f32 %v1338_v27, %v1610_v40  ;;  %v472_v10 = vpop.f32.mrb[17].mxu1  ;;  %v1745_v11 = vpop.f32.mrb[17].mxu0  ;;  %v779_v16 = vrot.slane %v1374_v9, 2 }
  0xff   :  { %v473_v12 = vadd.f32 %v472_v10, %v1620_v42  ;;  %v1339_v13 = vpop.f32.mrb[18].mxu1  ;;  %v1375_v14 = vpop.f32.mrb[18].mxu0  ;;  %v777_v40 = vrot.slane %v1745_v11, 2 }
 0x100   :  { %v484_v17 = vadd.f32 %v1339_v13, %v1638_v62  ;;  %v780_v18 = vrot.slane %v1375_v14, 2  ;;  %v475_v19 = vpop.f32.mrb[19].mxu1  ;;  %v653_v20 = vpop.f32.mrb[19].mxu0 }
 0x101   :  { %v476_v21 = vadd.f32 %v475_v19, %v1624_v43  ;;  %v778_v33 = vrot.slane %v653_v20, 2 }
 0x102   :  { %v838_v42 = vsel %vm809_vm2, %v779_v16, %v780_v18 }
 0x103   :  { %v844_v34 = vadd.f32 %v838_v42, %v481_v36  ;;  %v839_v35 = vsel %vm809_vm2, %v778_v33, %v779_v16  ;;  %v840_v62 = vsel %vm809_vm2, %v777_v40, %v778_v33 }
 0x104   :  { %v842_v38 = vadd.f32 %v840_v62, %v473_v12  ;;  %v843_v39 = vadd.f32 %v839_v35, %v476_v21 }
 0x105   :  { %v1342_v46 = vpop.f32.mrb[20].mxu1  ;;  %v1378_v47 = vpop.f32.mrb[20].mxu0 }
 0x106   :  { %v878_v43 = vsel %vm876_vm3, %v843_v39, -inf  ;;  %v909_v48 = vsel %vm149_vm0, %v842_v38, -inf  ;;  %v497_v49 = vadd.f32 %v1342_v46, %v1646_v0  ;;  %v488_v50 = vpop.f32.mrb[21].mxu1  ;;  %v666_v51 = vpop.f32.mrb[21].mxu0  ;;  %v783_v9 = vrot.slane %v1378_v47, 2 }
 0x107   :  { %v910_v52 = vsel %vm149_vm0, %v878_v43, -inf  ;;  %v489_v53 = vadd.f32 %v488_v50, %v1654_v2  ;;  %v781_v54 = vrot.slane %v666_v51, 2  ;;  %v1343_v55 = vpop.f32.mrb[22].mxu1  ;;  %v1379_v56 = vpop.f32.mrb[22].mxu0 }
 0x108   :  { %v911_v27 = vmax.f32 %v909_v48, %v910_v52  ;;  %v500_v36 = vadd.f32 %v1343_v55, %v1670_v22  ;;  %v784_v10 = vrot.slane %v1379_v56, 2  ;;  %v491_v12 = vpop.f32.mrb[23].mxu1  ;;  %v669_v13 = vpop.f32.mrb[23].mxu0 }
 0x109   :  { %v837_v14 = vsel %vm809_vm2, %v780_v18, %v781_v54  ;;  %v492_v0 = vadd.f32 %v491_v12, %v1658_v3  ;;  %v782_v16 = vrot.slane %v669_v13, 2  ;;  %v918_v3 = vsel %vm149_vm0, %v844_v34, -inf }
 0x10a   :  { %v912_v19 = vrot.slane %v911_v27, 4  ;;  %v845_v20 = vadd.f32 %v837_v14, %v484_v17  ;;  %v834_v2 = vsel %vm809_vm2, %v783_v9, %v784_v10 }
 0x10b   :  { %v848_v21 = vadd.f32 %v834_v2, %v497_v49  ;;  %v835_v33 = vsel %vm809_vm2, %v782_v16, %v783_v9  ;;  %v836_v22 = vsel %vm809_vm2, %v781_v54, %v782_v16 }
 0x10c   :  { %v913_v42 = vmax.f32 %v911_v27, %v912_v19  ;;  %v880_v35 = vsel %vm876_vm3, %v845_v20, -inf  ;;  %v846_v18 = vadd.f32 %v836_v22, %v489_v53  ;;  %v847_v62 = vadd.f32 %v835_v33, %v492_v0 }
 0x10d   :  { %v919_v17 = vsel %vm149_vm0, %v880_v35, -inf  ;;  %v1346_v38 = vpop.f32.mrb[24].mxu1  ;;  %v1382_v39 = vpop.f32.mrb[24].mxu0 }
 0x10e   :  { %v914_v46 = vrot.slane %v913_v42, 2  ;;  %v920_v47 = vmax.f32 %v918_v3, %v919_v17  ;;  %v882_v43 = vsel %vm876_vm3, %v847_v62, -inf  ;;  %v927_v48 = vsel %vm149_vm0, %v846_v18, -inf  ;;  %v504_v49 = vpop.f32.mrb[25].mxu1  ;;  %v682_v50 = vpop.f32.mrb[25].mxu0 }
 0x10f   :  { %v928_v51 = vsel %vm149_vm0, %v882_v43, -inf  ;;  %v513_v52 = vadd.f32 %v1346_v38, %v1678_v25  ;;  %v787_v53 = vrot.slane %v1382_v39, 2  ;;  %v505_v34 = vadd.f32 %v504_v49, %v1686_v29  ;;  %v1347_v54 = vpop.f32.mrb[26].mxu1  ;;  %v1383_v55 = vpop.f32.mrb[26].mxu0  ;;  %v1803_v17 = vld [vmem:[%s2049_s2] ss:$0 sm:$0xff] }
 0x110   :  { %v915_v56 = vmax.f32 %v913_v42, %v914_v46  ;;  %v921_v27 = vrot.slane %v920_v47, 4  ;;  %v929_v9 = vmax.f32 %v927_v48, %v928_v51  ;;  %v785_v12 = vrot.slane %v682_v50, 2  ;;  %v507_v13 = vpop.f32.mrb[27].mxu1  ;;  %v685_v14 = vpop.f32.mrb[27].mxu0  ;;  %s1457_s2 = smov [#allocation2]  }
 0x111   :  { %v516_v0 = vadd.f32 %v1347_v54, %v1702_v57  ;;  %v788_v16 = vrot.slane %v1383_v55, 2  ;;  %v508_v19 = vadd.f32 %v507_v13, %v1690_v30  ;;  %v786_v20 = vrot.slane %v685_v14, 2  ;;  %s1152_s29 = sshll.u32 %s1457_s2, 4  ;;  %s1153_s29 = int_to_ptr.vmem [resolvable:$true] %s1152_s29 }
 0x112   :  { %v916_v2 = vrot.slane %v915_v56, 1  ;;  %v922_v33 = vmax.f32 %v920_v47, %v921_v27  ;;  %v930_v25 = vrot.slane %v929_v9, 4  ;;  %v833_v29 = vsel %vm809_vm2, %v784_v10, %v785_v12  ;;  %s1433_s30 = scalar_lea.vmem %s1153_s29, 256  ;;  %p1438_p1 = scmp.lt.s32.totalorder %s1153_s29, %s1153_s29 }
 0x113   :  { %v849_v22 = vadd.f32 %v833_v29, %v500_v36  ;;  %v830_v42 = vsel %vm809_vm2, %v787_v53, %v788_v16  ;;  %v831_v35 = vsel %vm809_vm2, %v786_v20, %v787_v53  ;;  %v832_v57 = vsel %vm809_vm2, %v785_v12, %v786_v20  ;;  %p1434_p0 = scmp.ne.s32.totalorder %s1153_s29, %s1433_s30  ;;  %p1439_p2 = scmp.lt.s32.totalorder %s1433_s30, %s1433_s30 }
 0x114   :  { %v917_v18 = vmax.f32 %v915_v56, %v916_v2  ;;  %v923_v62 = vrot.slane %v922_v33, 2  ;;  %v931_v30 = vmax.f32 %v929_v9, %v930_v25  ;;  %v852_v3 = vadd.f32 %v830_v42, %v513_v52 }
 0x115   :  { %v884_v36 = vsel %vm876_vm3, %v849_v22, -inf  ;;  %v850_v10 = vadd.f32 %v832_v57, %v505_v34  ;;  %v851_v38 = vadd.f32 %v831_v35, %v508_v19  ;;  %v1350_v39 = vpop.f32.mrb[28].mxu1  ;;  %v1807_v46 = vpop.f32.mrb[28].mxu0  ;;  %v936_v43 = vsel %vm149_vm0, %v848_v21, -inf  ;;  %p1440_p3 = por %p1439_p2, %p1438_p1 }
 0x116   :  { %v924_v47 = vmax.f32 %v922_v33, %v923_v62  ;;  %v932_v48 = vrot.slane %v931_v30, 2  ;;  %v937_v49 = vsel %vm149_vm0, %v884_v36, -inf  ;;  %v520_v50 = vpop.f32.mrb[29].mxu1  ;;  %v698_v51 = vpop.f32.mrb[29].mxu0  ;;  %v1817_v56 = vadd.f32 %v1803_v17, %v917_v18 }
 0x117   :  { %v938_v52 = vmax.f32 %v936_v43, %v937_v49  ;;  %v886_v53 = vsel %vm876_vm3, %v851_v38, -inf  ;;  %v945_v54 = vsel %vm149_vm0, %v850_v10, -inf  ;;  %v1351_v55 = vpop.f32.mrb[30].mxu1  ;;  %v1814_v34 = vpop.f32.mrb[30].mxu0  ;;  %v529_v20 = vadd.f32 %v1350_v39, %v1710_v59  ;;  %p1441_p4 = pnand %p1440_p3, %p1434_p0 }
 0x118   :  { %v925_v27 = vrot.slane %v924_v47, 1  ;;  %v933_v9 = vmax.f32 %v931_v30, %v932_v48  ;;  %v946_v21 = vsel %vm149_vm0, %v886_v53, -inf  ;;  %v523_v12 = vpop.f32.mrb[31].mxu1  ;;  %v701_v13 = vpop.f32.mrb[31].mxu0  ;;  %v791_v2 = vrot.slane %v1807_v46, 2 }
 0x119   :  { %v939_v14 = vrot.slane %v938_v52, 4  ;;  %v947_v19 = vmax.f32 %v945_v54, %v946_v21  ;;  %v521_v29 = vadd.f32 %v520_v50, %v1730_v7  ;;  %v789_v22 = vrot.slane %v698_v51, 2 }
 0x11a   :  { %v926_v33 = vmax.f32 %v924_v47, %v925_v27  ;;  %v934_v25 = vrot.slane %v933_v9, 1  ;;  %v1824_v57 = vadd.f32 %v1351_v55, %v1716_v60  ;;  %v792_v18 = vrot.slane %v1814_v34, 2 }
 0x11b   :  { %v940_v42 = vmax.f32 %v938_v52, %v939_v14  ;;  %v948_v35 = vrot.slane %v947_v19, 4  ;;  %v829_v59 = vsel %vm809_vm2, %v788_v16, %v789_v22  ;;  %v524_v36 = vadd.f32 %v523_v12, %v1734_v28 }
 0x11c   :  { %v1061_v62 = vadd.f32 %v1803_v17, %v926_v33  ;;  %v935_v30 = vmax.f32 %v933_v9, %v934_v25  ;;  %v853_v39 = vadd.f32 %v829_v59, %v516_v0  ;;  %v826_v7 = vsel %vm809_vm2, %v791_v2, %v792_v18 }
 0x11d   :  { %v941_v10 = vrot.slane %v940_v42, 2  ;;  %v949_v38 = vmax.f32 %v947_v19, %v948_v35  ;;  %v1354_v46 = vpop.f32.mrb[32].mxu1  ;;  %v1833_v47 = vpop.f32.mrb[32].mxu0  ;;  %v856_v48 = vadd.f32 %v826_v7, %v529_v20  ;;  %v790_v49 = vrot.slane %v701_v13, 2 }
 0x11e   :  { %v1077_v60 = vmax.f32 %v1061_v62, 0.0  ;;  %v1836_v43 = vadd.f32 %v1803_v17, %v935_v30  ;;  %v536_v50 = vpop.f32.mrb[33].mxu1  ;;  %v714_v51 = vpop.f32.mrb[33].mxu0  ;;  %v888_v28 = vsel %vm876_vm3, %v853_v39, -inf  ;;  %v545_v0 = vadd.f32 %v1354_v46, %v1614_v41 }
 0x11f   :  { %v942_v16 = vmax.f32 %v940_v42, %v941_v10  ;;  %v950_v52 = vrot.slane %v949_v38, 2  ;;  %v1355_v53 = vpop.f32.mrb[34].mxu1  ;;  %v1841_v54 = vpop.f32.mrb[34].mxu0  ;;  %v1076_v55 = vmax.f32 %v1817_v56, 0.0  ;;  %v954_v27 = vsel %vm149_vm0, %v852_v3, -inf }
 0x120   :  { %v1844_v34 = vrot.slane %v1077_v60, 7  ;;  %v955_v9 = vsel %vm149_vm0, %v888_v28, -inf  ;;  %v539_v21 = vpop.f32.mrb[35].mxu1  ;;  %v717_v12 = vpop.f32.mrb[35].mxu0  ;;  %v827_v20 = vsel %vm809_vm2, %v790_v49, %v791_v2  ;;  %v1078_v41 = vmax.f32 %v1836_v43, 0.0 }
 0x121   :  { %v943_v13 = vrot.slane %v942_v16, 1  ;;  %v951_v14 = vmax.f32 %v949_v38, %v950_v52  ;;  %v956_v19 = vmax.f32 %v954_v27, %v955_v9  ;;  %v828_v33 = vsel %vm809_vm2, %v789_v22, %v790_v49 }
 0x122   :  { %v855_v25 = vadd.f32 %v827_v20, %v524_v36  ;;  %v795_v42 = vrot.slane %v1833_v47, 2  ;;  %v854_v30 = vadd.f32 %v828_v33, %v521_v29  ;;  %v537_v10 = vadd.f32 %v536_v50, %v1630_v44 }
 0x123   :  { %v944_v35 = vmax.f32 %v942_v16, %v943_v13  ;;  %v952_v3 = vrot.slane %v951_v14, 1  ;;  %v957_v62 = vrot.slane %v956_v19, 4  ;;  %v793_v38 = vrot.slane %v714_v51, 2 }
 0x124   :  { %v890_v59 = vsel %vm876_vm3, %v855_v25, -inf  ;;  %v1858_v2 = vadd.f32 %v1355_v53, %v1642_v63  ;;  %v963_v36 = vsel %vm149_vm0, %v854_v30, -inf  ;;  %v796_v44 = vrot.slane %v1841_v54, 2 }
 0x125   :  { %v1063_v39 = vadd.f32 %v1803_v17, %v944_v35  ;;  %v953_v7 = vmax.f32 %v951_v14, %v952_v3  ;;  %v958_v22 = vmax.f32 %v956_v19, %v957_v62  ;;  %v1358_v46 = vpop.f32.mrb[36].mxu1  ;;  %v1862_v47 = vpop.f32.mrb[36].mxu0  ;;  %v964_v29 = vsel %vm149_vm0, %v890_v59, -inf }
 0x126   :  { %v825_v60 = vsel %vm809_vm2, %v792_v18, %v793_v38  ;;  %v540_v43 = vadd.f32 %v539_v21, %v1634_v45  ;;  %v552_v63 = vpop.f32.mrb[37].mxu1  ;;  %v1869_v49 = vpop.f32.mrb[37].mxu0  ;;  %v965_v52 = vmax.f32 %v963_v36, %v964_v29  ;;  %v822_v18 = vsel %vm809_vm2, %v795_v42, %v796_v44 }
 0x127   :  { %v1079_v50 = vmax.f32 %v1063_v39, 0.0  ;;  %v1064_v51 = vadd.f32 %v1803_v17, %v953_v7  ;;  %v959_v16 = vrot.slane %v958_v22, 2  ;;  %v1359_v28 = vpop.f32.mrb[38].mxu1  ;;  %v1872_v53 = vpop.f32.mrb[38].mxu0  ;;  %v857_v27 = vadd.f32 %v825_v60, %v1824_v57 }
 0x128   :  { %v794_v9 = vrot.slane %v717_v12, 2  ;;  %v561_v54 = vadd.f32 %v1358_v46, %v1650_v1  ;;  %v555_v45 = vpop.f32.mrb[39].mxu1  ;;  %v733_v21 = vpop.f32.mrb[39].mxu0  ;;  %v972_v19 = vsel %vm149_vm0, %v856_v48, -inf  ;;  %v966_v20 = vrot.slane %v965_v52, 4 }
 0x129   :  { %v1080_v13 = vmax.f32 %v1064_v51, 0.0  ;;  %v960_v14 = vmax.f32 %v958_v22, %v959_v16  ;;  %v892_v33 = vsel %vm876_vm3, %v857_v27, -inf  ;;  %v860_v25 = vadd.f32 %v822_v18, %v545_v0 }
 0x12a   :  { %v823_v57 = vsel %vm809_vm2, %v794_v9, %v795_v42  ;;  %v824_v35 = vsel %vm809_vm2, %v793_v38, %v794_v9  ;;  %v1885_v12 = vrot.slane %v1078_v41, 6  ;;  %v967_v3 = vmax.f32 %v965_v52, %v966_v20 }
 0x12b   :  { %v961_v1 = vrot.slane %v960_v14, 1  ;;  %v973_v62 = vsel %vm149_vm0, %v892_v33, -inf  ;;  %v1888_v30 = vrot.slane %v1079_v50, 5  ;;  %v858_v59 = vadd.f32 %v824_v35, %v537_v10 }
 0x12c   :  { %v974_v48 = vmax.f32 %v972_v19, %v973_v62  ;;  %v859_v39 = vadd.f32 %v823_v57, %v540_v43  ;;  %v1890_v7 = vrot.slane %v1080_v13, 4  ;;  %v968_v22 = vrot.slane %v967_v3, 2 }
 0x12d   :  { %v962_v0 = vmax.f32 %v960_v14, %v961_v1  ;;  %v553_v42 = vadd.f32 %v552_v63, %v1662_v4  ;;  %v1362_v36 = vpop.f32.mrb[40].mxu1  ;;  %v1893_v46 = vpop.f32.mrb[40].mxu0  ;;  %v981_v29 = vsel %vm149_vm0, %v858_v59, -inf  ;;  %v797_v60 = vrot.slane %v1869_v49, 2 }
 0x12e   :  { %v975_v41 = vrot.slane %v974_v48, 4  ;;  %v894_v38 = vsel %vm876_vm3, %v859_v39, -inf  ;;  %v568_v50 = vpop.f32.mrb[41].mxu1  ;;  %v1899_v10 = vpop.f32.mrb[41].mxu0  ;;  %v969_v43 = vmax.f32 %v967_v3, %v968_v22  ;;  %v799_v16 = vrot.slane %v1862_v47, 2 }
 0x12f   :  { %v982_v51 = vsel %vm149_vm0, %v894_v38, -inf  ;;  %v564_v4 = vadd.f32 %v1359_v28, %v1674_v24  ;;  %v1363_v63 = vpop.f32.mrb[42].mxu1  ;;  %v1904_v52 = vpop.f32.mrb[42].mxu0  ;;  %v821_v9 = vsel %vm809_vm2, %v796_v44, %v797_v60  ;;  %v800_v49 = vrot.slane %v1872_v53, 2 }
 0x130   :  { %v976_v27 = vmax.f32 %v974_v48, %v975_v41  ;;  %v983_v18 = vmax.f32 %v981_v29, %v982_v51  ;;  %v571_v13 = vpop.f32.mrb[43].mxu1  ;;  %v1909_v14 = vpop.f32.mrb[43].mxu0  ;;  %v1912_v19 = vadd.f32 %v1803_v17, %v962_v0  ;;  %v970_v20 = vrot.slane %v969_v43, 1 }
 0x131   :  { %v861_v47 = vadd.f32 %v821_v9, %v1858_v2  ;;  %v556_v24 = vadd.f32 %v555_v45, %v1666_v5  ;;  %v818_v57 = vsel %vm809_vm2, %v799_v16, %v800_v49  ;;  %v798_v35 = vrot.slane %v733_v21, 2 }
 0x132   :  { %v977_v28 = vrot.slane %v976_v27, 2  ;;  %v984_v33 = vrot.slane %v983_v18, 4  ;;  %v990_v44 = vsel %vm149_vm0, %v860_v25, -inf  ;;  %v864_v1 = vadd.f32 %v818_v57, %v561_v54 }
 0x133   :  { %v896_v53 = vsel %vm876_vm3, %v861_v47, -inf  ;;  %v577_v3 = vadd.f32 %v1362_v36, %v1682_v26  ;;  %v819_v5 = vsel %vm809_vm2, %v798_v35, %v799_v16  ;;  %v1081_v45 = vmax.f32 %v1912_v19, 0.0 }
 0x134   :  { %v978_v62 = vmax.f32 %v976_v27, %v977_v28  ;;  %v985_v48 = vmax.f32 %v983_v18, %v984_v33  ;;  %v991_v2 = vsel %vm149_vm0, %v896_v53, -inf  ;;  %v971_v59 = vmax.f32 %v969_v43, %v970_v20 }
 0x135   :  { %v992_v39 = vmax.f32 %v990_v44, %v991_v2  ;;  %v820_v21 = vsel %vm809_vm2, %v797_v60, %v798_v35  ;;  %v1366_v25 = vpop.f32.mrb[44].mxu1  ;;  %v1928_v0 = vpop.f32.mrb[44].mxu0  ;;  %v1008_v26 = vsel %vm149_vm0, %v864_v1, -inf  ;;  %v863_v36 = vadd.f32 %v819_v5, %v556_v24 }
 0x136   :  { %v986_v54 = vrot.slane %v985_v48, 2  ;;  %v862_v22 = vadd.f32 %v820_v21, %v553_v42  ;;  %v584_v41 = vpop.f32.mrb[45].mxu1  ;;  %v1931_v38 = vpop.f32.mrb[45].mxu0  ;;  %v979_v29 = vrot.slane %v978_v62, 1  ;;  %v569_v16 = vadd.f32 %v568_v50, %v1694_v31 }
 0x137   :  { %v993_v51 = vrot.slane %v992_v39, 4  ;;  %v801_v43 = vrot.slane %v1899_v10, 2  ;;  %v1367_v27 = vpop.f32.mrb[46].mxu1  ;;  %v1935_v18 = vpop.f32.mrb[46].mxu0  ;;  %v898_v9 = vsel %vm876_vm3, %v863_v36, -inf  ;;  %v803_v42 = vrot.slane %v1893_v46, 2 }
 0x138   :  { %v987_v60 = vmax.f32 %v985_v48, %v986_v54  ;;  %v999_v20 = vsel %vm149_vm0, %v862_v22, -inf  ;;  %v587_v47 = vpop.f32.mrb[47].mxu1  ;;  %v1941_v24 = vpop.f32.mrb[47].mxu0  ;;  %v1000_v33 = vsel %vm149_vm0, %v898_v9, -inf  ;;  %v580_v50 = vadd.f32 %v1363_v63, %v1706_v58 }
 0x139   :  { %v994_v28 = vmax.f32 %v992_v39, %v993_v51  ;;  %v817_v31 = vsel %vm809_vm2, %v800_v49, %v801_v43  ;;  %v1001_v57 = vmax.f32 %v999_v20, %v1000_v33  ;;  %v804_v44 = vrot.slane %v1904_v52, 2 }
 0x13a   :  { %v988_v10 = vrot.slane %v987_v60, 1  ;;  %v865_v35 = vadd.f32 %v817_v31, %v564_v4  ;;  %v572_v1 = vadd.f32 %v571_v13, %v1698_v32  ;;  %v802_v46 = vrot.slane %v1909_v14, 2 }
 0x13b   :  { %v995_v53 = vrot.slane %v994_v28, 2  ;;  %v593_v48 = vadd.f32 %v1366_v25, %v1720_v61  ;;  %v1002_v5 = vrot.slane %v1001_v57, 4  ;;  %v814_v58 = vsel %vm809_vm2, %v803_v42, %v804_v44 }
 0x13c   :  { %v989_v2 = vmax.f32 %v987_v60, %v988_v10  ;;  %v900_v39 = vsel %vm876_vm3, %v865_v35, -inf  ;;  %v868_v49 = vadd.f32 %v814_v58, %v577_v3  ;;  %v815_v52 = vsel %vm809_vm2, %v802_v46, %v803_v42 }
 0x13d   :  { %v996_v63 = vmax.f32 %v994_v28, %v995_v53  ;;  %v1009_v4 = vsel %vm149_vm0, %v900_v39, -inf  ;;  %v1959_v32 = vadd.f32 %v1803_v17, %v971_v59  ;;  %v1003_v13 = vmax.f32 %v1001_v57, %v1002_v5 }
 0x13e   :  { %v1010_v61 = vmax.f32 %v1008_v26, %v1009_v4  ;;  %v816_v14 = vsel %vm809_vm2, %v801_v43, %v802_v46  ;;  %v980_v21 = vmax.f32 %v978_v62, %v979_v29  ;;  %v867_v22 = vadd.f32 %v815_v52, %v572_v1 }
 0x13f   :  { %v997_v25 = vrot.slane %v996_v63, 1  ;;  %v866_v54 = vadd.f32 %v816_v14, %v569_v16  ;;  %v1964_v36 = vadd.f32 %v1803_v17, %v989_v2  ;;  %v1004_v51 = vrot.slane %v1003_v13, 2 }
 0x140   :  { %v1011_v3 = vrot.slane %v1010_v61, 4  ;;  %v1026_v60 = vsel %vm149_vm0, %v868_v49, -inf  ;;  %v902_v59 = vsel %vm876_vm3, %v867_v22, -inf  ;;  %v585_v20 = vadd.f32 %v584_v41, %v1738_v37 }
 0x141   :  { %v998_v9 = vmax.f32 %v996_v63, %v997_v25  ;;  %v1017_v26 = vsel %vm149_vm0, %v866_v54, -inf  ;;  %v1005_v43 = vmax.f32 %v1003_v13, %v1004_v51  ;;  %v1018_v29 = vsel %vm149_vm0, %v902_v59, -inf }
 0x142   :  { %v1012_v62 = vmax.f32 %v1010_v61, %v1011_v3  ;;  %v805_v16 = vrot.slane %v1931_v38, 2  ;;  %v1019_v42 = vmax.f32 %v1017_v26, %v1018_v29  ;;  %v807_v28 = vrot.slane %v1928_v0, 2 }
 0x143   :  { %v596_v33 = vadd.f32 %v1367_v27, %v1726_v6  ;;  %v808_v31 = vrot.slane %v1935_v18, 2  ;;  %v1006_v10 = vrot.slane %v1005_v43, 1  ;;  %v588_v37 = vadd.f32 %v587_v47, %v1742_v8 }
 0x144   :  { %v1013_v57 = vrot.slane %v1012_v62, 2  ;;  %v813_v35 = vsel %vm809_vm2, %v804_v44, %v805_v16  ;;  %v1069_v41 = vadd.f32 %v1803_v17, %v998_v9  ;;  %v1020_v53 = vrot.slane %v1019_v42, 4 }
 0x145   :  { %v869_v1 = vadd.f32 %v813_v35, %v580_v50  ;;  %v810_v38 = vsel %vm809_vm2, %v807_v28, %v808_v31  ;;  %v1007_v0 = vmax.f32 %v1005_v43, %v1006_v10  ;;  %v841_v6 = vsel %vm809_vm2, %v808_v31, %v777_v40 }
 0x146   :  { %v1014_v46 = vmax.f32 %v1012_v62, %v1013_v57  ;;  %v872_v27 = vadd.f32 %v810_v38, %v593_v48  ;;  %v1084_v18 = vmax.f32 %v1964_v36, 0.0  ;;  %v1021_v44 = vmax.f32 %v1019_v42, %v1020_v53 }
 0x147   :  { %v904_v8 = vsel %vm876_vm3, %v869_v1, -inf  ;;  %v873_v47 = vadd.f32 %v841_v6, %v596_v33  ;;  %v1070_v50 = vadd.f32 %v1803_v17, %v1007_v0  ;;  %v806_v48 = vrot.slane %v1941_v24, 2 }
 0x148   :  { %v1015_v2 = vrot.slane %v1014_v46, 1  ;;  %v1027_v5 = vsel %vm149_vm0, %v904_v8, -inf  ;;  %v1044_v39 = vsel %vm149_vm0, %v872_v27, -inf  ;;  %v1022_v11 = vrot.slane %v1021_v44, 2 }
 0x149   :  { %v1028_v58 = vmax.f32 %v1026_v60, %v1027_v5  ;;  %v908_v40 = vsel %vm876_vm3, %v873_v47, -inf  ;;  %v1085_v63 = vmax.f32 %v1069_v41, 0.0  ;;  %v1086_v4 = vmax.f32 %v1070_v50, 0.0 }
 0x14a   :  { %v1016_v49 = vmax.f32 %v1014_v46, %v1015_v2  ;;  %v1045_v52 = vsel %vm149_vm0, %v908_v40, -inf  ;;  %v1023_v13 = vmax.f32 %v1021_v44, %v1022_v11  ;;  %v811_v25 = vsel %vm809_vm2, %v806_v48, %v807_v28 }
 0x14b   :  { %v1029_v61 = vrot.slane %v1028_v58, 4  ;;  %v1046_v14 = vmax.f32 %v1044_v39, %v1045_v52  ;;  %v812_v22 = vsel %vm809_vm2, %v805_v16, %v806_v48  ;;  %v871_v36 = vadd.f32 %v811_v25, %v588_v37 }
 0x14c   :  { %v1071_v54 = vadd.f32 %v1803_v17, %v1016_v49  ;;  %v1067_v24 = vadd.f32 %v1803_v17, %v980_v21  ;;  %v1024_v51 = vrot.slane %v1023_v13, 1  ;;  %v870_v9 = vadd.f32 %v812_v22, %v585_v20 }
 0x14d   :  { %v1030_v3 = vmax.f32 %v1028_v58, %v1029_v61  ;;  %v1047_v60 = vrot.slane %v1046_v14, 4  ;;  %v1129_v59 = vrot.slane %v1085_v63, 7  ;;  %v1131_v26 = vrot.slane %v1086_v4, 6 }
 0x14e   :  { %v1087_v43 = vmax.f32 %v1071_v54, 0.0  ;;  %v906_v62 = vsel %vm876_vm3, %v871_v36, -inf  ;;  %v1025_v29 = vmax.f32 %v1023_v13, %v1024_v51  ;;  %v1035_v23 = vsel %vm149_vm0, %v870_v9, -inf }
 0x14f   :  { %v1031_v42 = vrot.slane %v1030_v3, 2  ;;  %v1048_v28 = vmax.f32 %v1046_v14, %v1047_v60  ;;  %v1036_v16 = vsel %vm149_vm0, %v906_v62, -inf  ;;  %v1082_v21 = vmax.f32 %v1959_v32, 0.0 }
 0x150   :  { %v1083_v33 = vmax.f32 %v1067_v24, 0.0  ;;  %v1110_v20 = vsel %vm1109_vm4, %v1844_v34, %v1076_v55  ;;  %v1072_v31 = vadd.f32 %v1803_v17, %v1025_v29  ;;  %v1037_v57 = vmax.f32 %v1035_v23, %v1036_v16 }
 0x151   :  { %v1032_v10 = vmax.f32 %v1030_v3, %v1031_v42  ;;  %v1049_v15 = vrot.slane %v1048_v28, 2  ;;  %v1133_v35 = vrot.slane %v1087_v43, 5  ;;  %v1113_v37 = vsel %vm1112_vm5, %v1885_v12, %v1110_v20 }
 0x152   :  { %v1120_v41 = vrot.slane %v1081_v45, 3  ;;  %v1130_v32 = vsel %vm1109_vm4, %v1129_v59, %v1084_v18  ;;  %v1088_v53 = vmax.f32 %v1072_v31, 0.0  ;;  %v1038_v38 = vrot.slane %v1037_v57, 4 }
 0x153   :  { %v1033_v1 = vrot.slane %v1032_v10, 1  ;;  %v1050_v56 = vmax.f32 %v1048_v28, %v1049_v15  ;;  %v1116_v55 = vsel %vm1115_vm6, %v1888_v30, %v1113_v37  ;;  %v1123_v34 = vrot.slane %v1082_v21, 2 }
 0x154   :  { %v1126_v0 = vrot.slane %v1083_v33, 1  ;;  %v1132_v46 = vsel %vm1112_vm5, %v1131_v26, %v1130_v32  ;;  %v1135_v6 = vrot.slane %v1088_v53, 4  ;;  %v1039_v12 = vmax.f32 %v1037_v57, %v1038_v38 }
 0x155   :  { %v1034_v27 = vmax.f32 %v1032_v10, %v1033_v1  ;;  %v1051_v44 = vrot.slane %v1050_v56, 1  ;;  %v1119_v19 = vsel %vm1118_vm7, %v1890_v7, %v1116_v55  ;;  %v1134_v45 = vsel %vm1115_vm6, %v1133_v35, %v1132_v46 }
 0x156   :  { %v1040_v8 = vrot.slane %v1039_v12, 2  ;;  %v1122_v47 = vsel %vm1121_vm8, %v1120_v41, %v1119_v19  ;;  %v1136_v2 = vsel %vm1118_vm7, %v1135_v6, %v1134_v45 }
 0x157   :  { %v1073_v18 = vadd.f32 %v1803_v17, %v1034_v27  ;;  %v1052_v30 = vmax.f32 %v1050_v56, %v1051_v44  ;;  %v1125_v50 = vsel %vm1124_vm9, %v1123_v34, %v1122_v47 }
 0x158   :  { %v1041_v39 = vmax.f32 %v1039_v12, %v1040_v8  ;;  %v1128_v11 = vsel %vm1127_vm10, %v1126_v0, %v1125_v50 }
 0x159   :  { %v1089_v5 = vmax.f32 %v1073_v18, 0.0  ;;  %1145 = vst.msk [vmem:[#allocation2] sm:$0xff] %vm149_vm0, %v1128_v11  ;;  %v1075_v40 = vadd.f32 %v1803_v17, %v1052_v30 }
 0x15a   :  { %v1042_v7 = vrot.slane %v1041_v39, 1 }
 0x15b   :  { %v1137_v58 = vrot.slane %v1089_v5, 3  ;;  %v1091_v49 = vmax.f32 %v1075_v40, 0.0 }
 0x15c   :  { %v1043_v48 = vmax.f32 %v1041_v39, %v1042_v7 }
 0x15d   :  { %v1138_v63 = vsel %vm1121_vm8, %v1137_v58, %v1136_v2  ;;  %v1141_v61 = vrot.slane %v1091_v49, 1 }
 0x15e   :  { %v1074_v4 = vadd.f32 %v1803_v17, %v1043_v48 }
 0x160   :  { %v1090_v52 = vmax.f32 %v1074_v4, 0.0 }
 0x162   :  { %v1139_v13 = vrot.slane %v1090_v52, 2 }
 0x164   :  { %v1140_v14 = vsel %vm1124_vm9, %v1139_v13, %v1138_v63 }
 0x165   :  { %v1142_v25 = vsel %vm1127_vm10, %v1141_v61, %v1140_v14 }
 0x166   :  { %1146 = vst.msk [vmem:[#allocation2 + $0x8] sm:$0xff] %vm149_vm0, %v1142_v25 }
 0x167   :  { %1444 = shalt.err (!%p1441_p4)
}
 0x168   :  { %s1445_s6 = scalar_lea.hbm %s2050_s3, 256 }
 0x169   :  { %p1446_p5 = scmp.ne.s32.totalorder %s2050_s3, %s1445_s6  ;;  %p1449_p6 = scmp.lt.u32.totalorder %s1445_s6, %s2050_s3 }
 0x16b   :  { %p1451_p7 = pnand %p1449_p6, %p1446_p5 }
 0x16d   :  { %1454 = shalt.err (!%p1451_p7)
}
 0x16e   :  { %s1458_s11 = smov 128   ;;  %s1459_s12 = smov 8  }
 0x16f   :  { %1158 = dma.vmem_to_hbm [thread:$0]  %s1153_s29, 256, %s2050_s3, [#allocation3], %s1458_s11, %s1458_s11, %s1459_s12  }
 0x170   :  { %1455 = dma.done.wait [#allocation3], 256  }
 0x171   :  { %1456 = vsyncadd [#allocation3], 4294967040 }
 0x172   :  { %1162 = vsyncpa [#allocation3], 1 }

</bundles_post_ra>
